<compile_context>
chip_gen: v5e
topology: v5e:2x2
jax: 0.10.0
libtpu: 0.0.40
codegen_flags: <defaults>
</compile_context>

<pallas_src>
import functools

import jax
import jax.numpy as jnp
from jax.experimental import pallas as pl
from jax.experimental.pallas import tpu as pltpu

BN_EPS = 1e-5
LANE = 128


def _prober_kernel(num_hidden, *refs):
    """refs = (e, [w_h, gamma_beta_h] * num_hidden, w_out, o)."""
    e_ref = refs[0]
    o_ref = refs[-1]
    w_out_ref = refs[-2]
    layer_refs = refs[1:-2]

    def lin_bn_relu(h, w_ref, gb_ref):
        # Linear (hidden bias omitted: exactly cancelled by training-mode BN).
        z = jnp.dot(h, w_ref[...], preferred_element_type=jnp.float32)
        # BatchNorm1d, training-mode statistics (batch mean, biased variance).
        # Two-pass variance kept: numerically safer than E[z^2] - mu^2.
        mu = jnp.mean(z, axis=0, keepdims=True)
        d = z - mu
        var = jnp.mean(d * d, axis=0, keepdims=True)
        scale = gb_ref[0:1, :] * jax.lax.rsqrt(var + BN_EPS)   # rsqrt -> EUP slot
        shift = gb_ref[1:2, :] - mu * scale
        return jnp.maximum(z * scale + shift, 0.0)              # fused affine+ReLU

    h = e_ref[...].astype(jnp.float32)
    for i in range(num_hidden):
        h = lin_bn_relu(h, layer_refs[2 * i], layer_refs[2 * i + 1])
    # Final projection, no bias.  Output N is pre-padded to a multiple of 128
    # lanes in prepare_params(), so this store is lane-dense.
    o_ref[...] = jnp.dot(h, w_out_ref[...],
                         preferred_element_type=jnp.float32).astype(o_ref.dtype)


def _round_up(n, m):
    return ((n + m - 1) // m) * m


def _pad_axis(a, axis, new_size):
    pad = new_size - a.shape[axis]
    if pad == 0:
        return a
    widths = [(0, 0)] * a.ndim
    widths[axis] = (0, pad)
    return jnp.pad(a, widths)


def prepare_params(params):
    """One-time packing/padding of parameters for the kernel (hoisted out of
    the forward path).  Hidden widths stay at their natural size; only the
    output projection's N dim is zero-padded to 128 for a lane-dense store."""
    hidden_ws = params["hidden_w"]       # list of [in, out]
    gammas = params["gamma"]
    betas = params["beta"]
    w_out = params["w_out"]              # [in, out_dim], bias=False
    out_dim = w_out.shape[1]
    out_pad = _round_up(out_dim, LANE)

    tensors = []
    for w, g, be in zip(hidden_ws, gammas, betas):
        tensors.append(jnp.asarray(w, jnp.float32))
        tensors.append(jnp.stack([jnp.asarray(g, jnp.float32),
                                  jnp.asarray(be, jnp.float32)], axis=0))  # (2,H)
    tensors.append(_pad_axis(jnp.asarray(w_out, jnp.float32), 1, out_pad))

    return {
        "tensors": tuple(tensors),
        "num_hidden": len(hidden_ws),
        "out_dim": int(out_dim),
        "out_pad": int(out_pad),
    }


def prober_forward(e, prepared, output_shape):
    """Pallas-backed equivalent of Prober.forward(e) using prepare_params()."""
    B = e.shape[0]
    tensors = prepared["tensors"]
    num_hidden = prepared["num_hidden"]
    out_dim = prepared["out_dim"]
    out_pad = prepared["out_pad"]

    kernel_args = (e,) + tensors

    # --- advisory cost estimate (latency-bound kernel; helps XLA overlap it) --
    flops = 0
    transcendentals = 0
    prev = e.shape[1]
    for i in range(num_hidden):
        w = tensors[2 * i]
        flops += 2 * B * w.shape[0] * w.shape[1]
        transcendentals += w.shape[1]          # one rsqrt per feature per layer
        prev = w.shape[1]
    w_out_p = tensors[-1]
    flops += 2 * B * w_out_p.shape[0] * w_out_p.shape[1]
    arg_bytes = sum(a.size * a.dtype.itemsize for a in kernel_args)
    out_bytes = B * out_pad * 4
    cost = pl.CostEstimate(flops=flops, transcendentals=transcendentals,
                           bytes_accessed=arg_bytes + out_bytes)

    # --- explicit VMEM budget (whole-batch-resident design) --------------------
    max_width = max([e.shape[1], out_pad] +
                    [tensors[2 * i].shape[1] for i in range(num_hidden)])
    act_bytes = 3 * B * max_width * 4          # z, d, h live tiles
    need = arg_bytes + out_bytes + act_bytes
    vmem_limit = int(min(max(2 * need, 8 << 20), 64 << 20))

    vmem = pl.BlockSpec(memory_space=pltpu.MemorySpace.VMEM)
    out = pl.pallas_call(
        functools.partial(_prober_kernel, num_hidden),
        out_shape=jax.ShapeDtypeStruct((B, out_pad), jnp.float32),
        in_specs=[vmem] * len(kernel_args),
        out_specs=vmem,
        compiler_params=pltpu.CompilerParams(vmem_limit_bytes=vmem_limit),
        cost_estimate=cost,
    )(*kernel_args)

    return out[:, :out_dim].reshape((B,) + tuple(output_shape))


def init_params(key, embedding, arch, output_dim):
    """PyTorch-style init: Linear weights/biases ~ U(+-1/sqrt(fan_in))."""
    arch_list = [int(a) for a in arch.split("-")] if arch else []
    f = [embedding] + arch_list + [output_dim]
    ks = jax.random.split(key, 2 * (len(f) - 1))

    def uniform(k, shape, fan_in):
        bound = 1.0 / (fan_in ** 0.5)
        return jax.random.uniform(k, shape, jnp.float32, -bound, bound)

    hidden_w, hidden_b, gamma, beta = [], [], [], []
    for i in range(len(f) - 2):
        hidden_w.append(uniform(ks[2 * i], (f[i], f[i + 1]), f[i]))   # [in,out]
        hidden_b.append(uniform(ks[2 * i + 1], (f[i + 1],), f[i]))
        gamma.append(jnp.ones((f[i + 1],), jnp.float32))    # BN weight default
        beta.append(jnp.zeros((f[i + 1],), jnp.float32))    # BN bias default
    w_out = uniform(ks[-2], (f[-2], f[-1]), f[-2])           # final Linear, no bias
    return {"hidden_w": hidden_w, "hidden_b": hidden_b,
            "gamma": gamma, "beta": beta, "w_out": w_out}


def prober_reference(e, params, output_shape):
    """Pure-JAX reference with full PyTorch semantics (including biases)."""
    h = e
    for w, b, g, be in zip(params["hidden_w"], params["hidden_b"],
                           params["gamma"], params["beta"]):
        z = h @ w + b
        mu = jnp.mean(z, axis=0, keepdims=True)
        var = jnp.mean((z - mu) ** 2, axis=0, keepdims=True)
        h = jnp.maximum((z - mu) / jnp.sqrt(var + BN_EPS) * g + be, 0.0)
    y = h @ params["w_out"]
    return y.reshape((e.shape[0],) + tuple(output_shape))


if __name__ == "__main__":
    # Small shapes consistent with the module: embedding=32, arch="64-64",
    # output_shape=(8, 2) -> output_dim=16, batch=8.
    B, EMBEDDING = 8, 32
    ARCH = "64-64"
    OUTPUT_SHAPE = (8, 2)
    OUT_DIM = 1
    for d in OUTPUT_SHAPE:
        OUT_DIM *= d

    key = jax.random.PRNGKey(0)
    k_params, k_e = jax.random.split(key)

    params = init_params(k_params, EMBEDDING, ARCH, OUT_DIM)
    prepared = prepare_params(params)          # one-time packing/padding
    e = jax.random.normal(k_e, (B, EMBEDDING), jnp.float32)

    out = jax.block_until_ready(prober_forward(e, prepared, OUTPUT_SHAPE))
    ref = jax.block_until_ready(prober_reference(e, params, OUTPUT_SHAPE))

    assert out.shape == (B,) + OUTPUT_SHAPE
    assert jnp.allclose(out, ref, atol=1e-4, rtol=1e-4), "mismatch vs reference"

    print("KERNEL_OK")
</pallas_src>

<mosaic_0001>
module attributes {stable_mosaic.version = 11 : i64} {
  func.func @_prober_kernel(%arg0: memref<8x32xf32, #tpu.memory_space<vmem>>, %arg1: memref<32x64xf32, #tpu.memory_space<vmem>>, %arg2: memref<2x64xf32, #tpu.memory_space<vmem>>, %arg3: memref<64x64xf32, #tpu.memory_space<vmem>>, %arg4: memref<2x64xf32, #tpu.memory_space<vmem>>, %arg5: memref<64x128xf32, #tpu.memory_space<vmem>>, %arg6: memref<8x128xf32, #tpu.memory_space<vmem>>) attributes {dimension_semantics = [], scalar_prefetch = 0 : i64, scratch_operands = 0 : i64, tpu.core_type = #tpu.core_type<tc>} {
    %c0 = arith.constant 0 : index
    %c0_0 = arith.constant 0 : index
    %0 = vector.load %arg0[%c0, %c0_0] : memref<8x32xf32, #tpu.memory_space<vmem>>, vector<8x32xf32>
    %c0_1 = arith.constant 0 : index
    %c0_2 = arith.constant 0 : index
    %1 = vector.load %arg1[%c0_1, %c0_2] : memref<32x64xf32, #tpu.memory_space<vmem>>, vector<32x64xf32>
    %cst = arith.constant dense<0.000000e+00> : vector<8x64xf32>
    %2 = tpu.matmul %0, %1, %cst {dimension_numbers = #tpu.dot_dimension_numbers<[1], [0], [0], [1], [0, 0, 1, 1], [], []>} : vector<8x32xf32>, vector<32x64xf32>, vector<8x64xf32> -> vector<8x64xf32>
    %cst_3 = arith.constant dense<0.000000e+00> : vector<64xf32>
    %3 = vector.multi_reduction <add>, %2, %cst_3 [0] : vector<8x64xf32> to vector<64xf32>
    %4 = vector.shape_cast %3 : vector<64xf32> to vector<1x64xf32>
    %cst_4 = arith.constant 8.000000e+00 : f32
    %5 = vector.broadcast %cst_4 : f32 to vector<1x64xf32>
    %6 = arith.divf %4, %5 : vector<1x64xf32>
    %7 = vector.broadcast %6 : vector<1x64xf32> to vector<8x64xf32>
    %8 = arith.subf %2, %7 : vector<8x64xf32>
    %9 = arith.mulf %8, %8 : vector<8x64xf32>
    %cst_5 = arith.constant dense<0.000000e+00> : vector<64xf32>
    %10 = vector.multi_reduction <add>, %9, %cst_5 [0] : vector<8x64xf32> to vector<64xf32>
    %11 = vector.shape_cast %10 : vector<64xf32> to vector<1x64xf32>
    %cst_6 = arith.constant 8.000000e+00 : f32
    %12 = vector.broadcast %cst_6 : f32 to vector<1x64xf32>
    %13 = arith.divf %11, %12 : vector<1x64xf32>
    %c0_7 = arith.constant 0 : index
    %c0_8 = arith.constant 0 : index
    %14 = vector.load %arg2[%c0_7, %c0_8] : memref<2x64xf32, #tpu.memory_space<vmem>>, vector<1x64xf32>
    %cst_9 = arith.constant 9.99999974E-6 : f32
    %15 = vector.broadcast %cst_9 : f32 to vector<1x64xf32>
    %16 = arith.addf %13, %15 : vector<1x64xf32>
    %17 = math.rsqrt %16 : vector<1x64xf32>
    %18 = arith.mulf %14, %17 : vector<1x64xf32>
    %c1 = arith.constant 1 : index
    %c0_10 = arith.constant 0 : index
    %19 = vector.load %arg2[%c1, %c0_10] : memref<2x64xf32, #tpu.memory_space<vmem>>, vector<1x64xf32>
    %20 = arith.mulf %6, %18 : vector<1x64xf32>
    %21 = arith.subf %19, %20 : vector<1x64xf32>
    %22 = vector.broadcast %18 : vector<1x64xf32> to vector<8x64xf32>
    %23 = arith.mulf %2, %22 : vector<8x64xf32>
    %24 = vector.broadcast %21 : vector<1x64xf32> to vector<8x64xf32>
    %25 = arith.addf %23, %24 : vector<8x64xf32>
    %cst_11 = arith.constant 0.000000e+00 : f32
    %26 = vector.broadcast %cst_11 : f32 to vector<8x64xf32>
    %27 = arith.maximumf %25, %26 : vector<8x64xf32>
    %c0_12 = arith.constant 0 : index
    %c0_13 = arith.constant 0 : index
    %28 = vector.load %arg3[%c0_12, %c0_13] : memref<64x64xf32, #tpu.memory_space<vmem>>, vector<64x64xf32>
    %cst_14 = arith.constant dense<0.000000e+00> : vector<8x64xf32>
    %29 = tpu.matmul %27, %28, %cst_14 {dimension_numbers = #tpu.dot_dimension_numbers<[1], [0], [0], [1], [0, 0, 1, 1], [], []>} : vector<8x64xf32>, vector<64x64xf32>, vector<8x64xf32> -> vector<8x64xf32>
    %cst_15 = arith.constant dense<0.000000e+00> : vector<64xf32>
    %30 = vector.multi_reduction <add>, %29, %cst_15 [0] : vector<8x64xf32> to vector<64xf32>
    %31 = vector.shape_cast %30 : vector<64xf32> to vector<1x64xf32>
    %cst_16 = arith.constant 8.000000e+00 : f32
    %32 = vector.broadcast %cst_16 : f32 to vector<1x64xf32>
    %33 = arith.divf %31, %32 : vector<1x64xf32>
    %34 = vector.broadcast %33 : vector<1x64xf32> to vector<8x64xf32>
    %35 = arith.subf %29, %34 : vector<8x64xf32>
    %36 = arith.mulf %35, %35 : vector<8x64xf32>
    %cst_17 = arith.constant dense<0.000000e+00> : vector<64xf32>
    %37 = vector.multi_reduction <add>, %36, %cst_17 [0] : vector<8x64xf32> to vector<64xf32>
    %38 = vector.shape_cast %37 : vector<64xf32> to vector<1x64xf32>
    %cst_18 = arith.constant 8.000000e+00 : f32
    %39 = vector.broadcast %cst_18 : f32 to vector<1x64xf32>
    %40 = arith.divf %38, %39 : vector<1x64xf32>
    %c0_19 = arith.constant 0 : index
    %c0_20 = arith.constant 0 : index
    %41 = vector.load %arg4[%c0_19, %c0_20] : memref<2x64xf32, #tpu.memory_space<vmem>>, vector<1x64xf32>
    %cst_21 = arith.constant 9.99999974E-6 : f32
    %42 = vector.broadcast %cst_21 : f32 to vector<1x64xf32>
    %43 = arith.addf %40, %42 : vector<1x64xf32>
    %44 = math.rsqrt %43 : vector<1x64xf32>
    %45 = arith.mulf %41, %44 : vector<1x64xf32>
    %c1_22 = arith.constant 1 : index
    %c0_23 = arith.constant 0 : index
    %46 = vector.load %arg4[%c1_22, %c0_23] : memref<2x64xf32, #tpu.memory_space<vmem>>, vector<1x64xf32>
    %47 = arith.mulf %33, %45 : vector<1x64xf32>
    %48 = arith.subf %46, %47 : vector<1x64xf32>
    %49 = vector.broadcast %45 : vector<1x64xf32> to vector<8x64xf32>
    %50 = arith.mulf %29, %49 : vector<8x64xf32>
    %51 = vector.broadcast %48 : vector<1x64xf32> to vector<8x64xf32>
    %52 = arith.addf %50, %51 : vector<8x64xf32>
    %cst_24 = arith.constant 0.000000e+00 : f32
    %53 = vector.broadcast %cst_24 : f32 to vector<8x64xf32>
    %54 = arith.maximumf %52, %53 : vector<8x64xf32>
    %c0_25 = arith.constant 0 : index
    %c0_26 = arith.constant 0 : index
    %55 = vector.load %arg5[%c0_25, %c0_26] : memref<64x128xf32, #tpu.memory_space<vmem>>, vector<64x128xf32>
    %cst_27 = arith.constant dense<0.000000e+00> : vector<8x128xf32>
    %56 = tpu.matmul %54, %55, %cst_27 {dimension_numbers = #tpu.dot_dimension_numbers<[1], [0], [0], [1], [0, 0, 1, 1], [], []>} : vector<8x64xf32>, vector<64x128xf32>, vector<8x128xf32> -> vector<8x128xf32>
    %c0_28 = arith.constant 0 : index
    %c0_29 = arith.constant 0 : index
    %57 = vector.load %arg6[%c0_28, %c0_29] : memref<8x128xf32, #tpu.memory_space<vmem>>, vector<8x128xf32>
    tpu.vector_store %arg6[%c0_28, %c0_29], %56 {strides = array<i32>} : memref<8x128xf32, #tpu.memory_space<vmem>>, vector<8x128xf32>,
    return
  }
}

</mosaic_0001>

<bundles_post_ra>
// kernel: tpu_custom_call.1
= control target key start
LH: loop header
LB: loop body
LE: loop exit
PB: predicated region body
PF: predicated region fallthrough
CT: control target
= control target key end

     0   :  { %11 = vsyncpa [#allocation3], 0  ;;  %s545_s0 = inlined_call_operand.hbm [shape: f32[8,32], index: 0, kind: input, shape index: {}]   ;;  %s546_s1 = inlined_call_operand.hbm [shape: f32[32,64], index: 1, kind: input, shape index: {}]   ;;  %s547_s2 = inlined_call_operand.hbm [shape: f32[2,64], index: 2, kind: input, shape index: {}]   ;;  %s548_s3 = inlined_call_operand.hbm [shape: f32[64,64], index: 3, kind: input, shape index: {}]   ;;  %s549_s4 = inlined_call_operand.vmem [shape: f32[2,64], index: 4, kind: input, shape index: {}]   ;;  %s550_s5 = inlined_call_operand.hbm [shape: f32[64,128], index: 5, kind: input, shape index: {}]   ;;  %s551_s6 = inlined_call_operand.hbm [shape: f32[8,128], index: 6, kind: output, shape index: {}]  }
   0x1   :  { %12 = vsyncpa [#allocation6], 0 }
   0x2   :  { %13 = vsyncpa [#allocation9], 0  ;;  %s30_s23 = sshll.u32 %s546_s1, 4  ;;  %s31_s23 = int_to_ptr.hbm [resolvable:$true] %s30_s23 }
   0x3   :  { %14 = vsyncpa [#allocation4], 0  ;;  %s465_s24 = smov [#allocation5]   ;;  %s54_s28 = sshll.u32 %s548_s3, 4  ;;  %s55_s28 = int_to_ptr.hbm [resolvable:$true] %s54_s28 }
   0x4   :  { %s32_s25 = sshll.u32 %s465_s24, 4  ;;  %s466_s29 = smov 128   ;;  %s33_s25 = int_to_ptr.vmem [resolvable:$true] %s32_s25 }
   0x5   :  { %s467_s30 = smov 8   ;;  %s468_s7 = smov [#allocation8]  }
   0x6   :  { %38 = dma.hbm_to_vmem [thread:$0]  %s31_s23, 512, %s33_s25, [#allocation6], %s466_s29, %s466_s29, %s467_s30  }
   0x7   :  { %s56_s8 = sshll.u32 %s468_s7, 4  ;;  %s20_s11 = sshll.u32 %s545_s0, 4  ;;  %s57_s8 = int_to_ptr.vmem [resolvable:$true] %s56_s8  ;;  %s21_s11 = int_to_ptr.hbm [resolvable:$true] %s20_s11 }
   0x8   :  { %62 = dma.hbm_to_vmem [thread:$0]  %s55_s28, 1024, %s57_s8, [#allocation9], %s466_s29, %s466_s29, %s467_s30  }
   0x9   :  { %s44_s13 = sshll.u32 %s547_s2, 4  ;;  %s469_s14 = smov [#allocation2]   ;;  %s45_s13 = int_to_ptr.hbm [resolvable:$true] %s44_s13 }
   0xa   :  { %s22_s15 = sshll.u32 %s469_s14, 4  ;;  %s470_s3 = smov [#allocation7]   ;;  %s23_s15 = int_to_ptr.vmem [resolvable:$true] %s22_s15 }
   0xb   :  { %25 = dma.hbm_to_vmem [thread:$0]  %s21_s11, 128, %s23_s15, [#allocation3]  }
   0xc   :  { %s46_s16 = sshll.u32 %s470_s3, 4  ;;  %s69_s19 = sshll.u32 %s550_s5, 4  ;;  %s47_s16 = int_to_ptr.vmem [resolvable:$true] %s46_s16  ;;  %s70_s19 = int_to_ptr.hbm [resolvable:$true] %s69_s19 }
   0xd   :  { %49 = dma.hbm_to_vmem [thread:$0]  %s45_s13, 32, %s47_s16, [#allocation6]  }
   0xe   :  { %s471_s0 = smov [#allocation10]  }
   0xf   :  { %s71_s20 = sshll.u32 %s471_s0, 4  ;;  %s72_s20 = int_to_ptr.vmem [resolvable:$true] %s71_s20 }
  0x10   :  { %77 = dma.hbm_to_vmem [thread:$0]  %s70_s19, 1024, %s72_s20, [#allocation9], %s466_s29, %s466_s29, %s467_s30  }
  0x11   :  { %457 = dma.done.wait [#allocation3], 128  }
  0x12   :  { %458 = vsyncadd [#allocation3], 4294967168 }
  0x13   :  { %459 = dma.done.wait [#allocation6], 544  }
  0x14   :  { %460 = vsyncadd [#allocation6], 4294966752 }
  0x15   :  { %461 = dma.done.wait [#allocation9], 2048  }
  0x16   :  { %462 = vsyncadd [#allocation9], 4294965248  ;;  %v102_v0 = vld [vmem:[#allocation5 + $0x18] sm:$0xff]  ;;  %v101_v1 = vld [vmem:[#allocation5 + $0x10] sm:$0xff]  ;;  %vm103_vm0 = vcmask 261120   ;;  %v472_v5 = vmov 8.0  }
  0x17   :  { %119 = vmatpush.msra.mxu0 %v102_v0  ;;  %v100_v2 = vld [vmem:[#allocation5 + $0x8] sm:$0xff]  ;;  %v99_v3 = vld [vmem:[#allocation5] sm:$0xff]  ;;  %v98_v4 = vld [vmem:[#allocation2] sm:$0xff]  ;;  %307 = vrcp.f32 %v472_v5  ;;  %vm127_vm1 = vcmask 523264   ;;  %s473_s23 = smov [#allocation11]   ;;  %s283_s27 = sshll.u32 %s551_s6, 4  ;;  %s284_s27 = int_to_ptr.hbm [resolvable:$true] %s283_s27 }
  0x18   :  { %v181_v23 = vld [vmem:[#allocation8 + $0x38] sm:$0xff]  ;;  %v180_v26 = vld [vmem:[#allocation8 + $0x30] sm:$0xff]  ;;  %v179_v28 = vld [vmem:[#allocation8 + $0x28] sm:$0xff]  ;;  %s281_s24 = sshll.u32 %s473_s23, 4  ;;  %s282_s24 = int_to_ptr.vmem [resolvable:$true] %s281_s24 }
  0x19   :  { %120 = vmatpush.msra.mxu0 %v101_v1  ;;  %193 = vmatpush.msra.mxu1 %v181_v23  ;;  %v178_v30 = vld [vmem:[#allocation8 + $0x20] sm:$0xff]  ;;  %v177_v32 = vld [vmem:[#allocation8 + $0x18] sm:$0xff]  ;;  %v176_v34 = vld [vmem:[#allocation8 + $0x10] sm:$0xff] }
  0x1a   :  { %v175_v36 = vld [vmem:[#allocation8 + $0x8] sm:$0xff]  ;;  %v174_v37 = vld [vmem:[#allocation8] sm:$0xff]  ;;  %v153_v45 = vld [vmem:[#allocation7] sm:$0x1] }
  0x1b   :  { %121 = vmatpush.msra.mxu0 %v100_v2  ;;  %194 = vmatpush.msra.mxu1 %v180_v26  ;;  %v166_v49 = vld [vmem:[#allocation7 + $0x1] sm:$0x1] }
  0x1d   :  { %122 = vmatpush.msra.mxu0 %v99_v3  ;;  %v308_v6 = vpop.eup %307  ;;  %195 = vmatpush.msra.mxu1 %v179_v28 }
  0x1e   :  { %295 = vmatmul.msk.f32.vlgmr.msra.gmra.mxu0 %vm103_vm0, %v98_v4  ;;  %v136_v7 = vmul.f32 8.0, %v308_v6  ;;  %vm140_vm2 = vweird.f32 %v308_v6  ;;  %v251_v4 = vld [vmem:[#allocation10 + $0x38] sm:$0xff] }
  0x1f   :  { %196 = vmatpush.msra.mxu1 %v178_v30  ;;  %263 = vmatpush.msra.mxu2 %v251_v4 }
  0x20   :  { %v137_v8 = vsub.f32 1.0, %v136_v7  ;;  %v250_v7 = vld [vmem:[#allocation10 + $0x30] sm:$0xff] }
  0x21   :  { %197 = vmatpush.msra.mxu1 %v177_v32  ;;  %264 = vmatpush.msra.mxu2 %v250_v7 }
  0x22   :  { %v138_v12 = vmul.f32 %v308_v6, %v137_v8 }
  0x23   :  { %198 = vmatpush.msra.mxu1 %v176_v34 }
  0x24   :  { %v139_v15 = vadd.f32 %v308_v6, %v138_v12 }
  0x25   :  { %199 = vmatpush.msra.mxu1 %v175_v36 }
  0x26   :  { %v525_v18 = vsel %vm140_vm2, %v308_v6, %v139_v15  ;;  %v246_v15 = vld [vmem:[#allocation10 + $0x10] sm:$0xff] }
  0x27   :  { %200 = vmatpush.msra.mxu1 %v174_v37 }
  0x9b   :  { %v124_v9 = vpop.f32.mrf.mxu0 }
  0x9c   :  { %v128_v10 = vsel %vm127_vm1, %v124_v9, 0.0 }
  0x9d   :  { %v129_v11 = vrot.slane %v128_v10, 4 }
  0x9f   :  { %v130_v13 = vadd.f32 %v129_v11, %v128_v10  ;;  %v248_v11 = vld [vmem:[#allocation10 + $0x20] sm:$0xff] }
  0xa1   :  { %v131_v14 = vrot.slane %v130_v13, 2 }
  0xa3   :  { %v132_v16 = vadd.f32 %v131_v14, %v130_v13  ;;  %v247_v13 = vld [vmem:[#allocation10 + $0x18] sm:$0xff] }
  0xa5   :  { %v133_v17 = vrot.slane %v132_v16, 1 }
  0xa7   :  { %v134_v19 = vadd.f32 %v133_v17, %v132_v16  ;;  %v245_v17 = vld [vmem:[#allocation10 + $0x8] sm:$0xff] }
  0xa9   :  { %v142_v20 = vmul.f32 %v525_v18, %v134_v19  ;;  %v244_v19 = vld [vmem:[#allocation10] sm:$0xff] }
  0xab   :  { %v143_v21 = vsub.f32 %v124_v9, %v142_v20 }
  0xad   :  { %v144_v22 = vmul.f32 %v143_v21, %v143_v21 }
  0xaf   :  { %v145_v24 = vsel %vm127_vm1, %v144_v22, 0.0 }
  0xb0   :  { %v146_v25 = vrot.slane %v145_v24, 4 }
  0xb2   :  { %v147_v27 = vadd.f32 %v146_v25, %v145_v24 }
  0xb4   :  { %v148_v29 = vrot.slane %v147_v27, 2 }
  0xb6   :  { %v149_v31 = vadd.f32 %v148_v29, %v147_v27  ;;  %v223_v27 = vld [vmem:[%s549_s4] sm:$0x1] }
  0xb8   :  { %v150_v33 = vrot.slane %v149_v31, 1 }
  0xba   :  { %v151_v35 = vadd.f32 %v150_v33, %v149_v31 }
  0xbc   :  { %v152_v38 = vmul.f32 %v151_v35, %v525_v18 }
  0xbe   :  { %v154_v39 = vadd.f32 1e-05, %v152_v38 }
  0xc0   :  { %309 = vrsqrt.f32 %v154_v39  ;;  %vm161_vm4 = vweird.f32 %v154_v39 }
  0xc6   :  { %v310_v40 = vpop.eup %309 }
  0xc7   :  { %v156_v41 = vmul.f32 %v310_v40, %v154_v39  ;;  %vm162_vm3 = vweird.f32 %v310_v40 }
  0xc8   :  { %vm163_vm5 = vmor %vm161_vm4, %vm162_vm3 }
  0xc9   :  { %v157_v42 = vmul.f32 %v310_v40, %v156_v41 }
  0xcb   :  { %v158_v43 = vmul.f32 0.5, %v157_v42 }
  0xcd   :  { %v159_v44 = vsub.f32 1.5, %v158_v43 }
  0xcf   :  { %v160_v46 = vmul.f32 %v310_v40, %v159_v44 }
  0xd1   :  { %v164_v47 = vsel %vm163_vm5, %v310_v40, %v160_v46 }
  0xd2   :  { %v165_v48 = vmul.f32 %v164_v47, %v153_v45 }
  0xd4   :  { %v167_v50 = vmul.f32 %v165_v48, %v142_v20  ;;  %v169_v51 = vperm.slane %v165_v48, 0 }
  0xd6   :  { %v168_v52 = vsub.f32 %v166_v49, %v167_v50  ;;  %v170_v53 = vmul.f32 %v169_v51, %v124_v9  ;;  %v249_v9 = vld [vmem:[#allocation10 + $0x28] sm:$0xff] }
  0xd7   :  { %265 = vmatpush.msra.mxu2 %v249_v9 }
  0xd8   :  { %v171_v54 = vperm.slane %v168_v52, 0 }
  0xd9   :  { %266 = vmatpush.msra.mxu2 %v248_v11 }
  0xda   :  { %v172_v55 = vadd.f32 %v171_v54, %v170_v53 }
  0xdb   :  { %267 = vmatpush.msra.mxu2 %v247_v13 }
  0xdc   :  { %v173_v56 = vmax.f32 %v172_v55, 0.0 }
  0xdd   :  { %268 = vmatpush.msra.mxu2 %v246_v15 }
  0xde   :  { %296 = vmatmul.msk.f32.vlgmr.msra.gmra.mxu1 %vm127_vm1, %v173_v56 }
  0xdf   :  { %269 = vmatpush.msra.mxu2 %v245_v17 }
  0xe1   :  { %270 = vmatpush.msra.mxu2 %v244_v19 }
 0x15b   :  { %v202_v57 = vpop.f32.mrf.mxu1 }
 0x15c   :  { %v205_v58 = vsel %vm127_vm1, %v202_v57, 0.0 }
 0x15d   :  { %v206_v59 = vrot.slane %v205_v58, 4 }
 0x15f   :  { %v207_v60 = vadd.f32 %v206_v59, %v205_v58 }
 0x161   :  { %v208_v61 = vrot.slane %v207_v60, 2 }
 0x163   :  { %v209_v62 = vadd.f32 %v208_v61, %v207_v60 }
 0x165   :  { %v210_v63 = vrot.slane %v209_v62, 1 }
 0x167   :  { %v211_v0 = vadd.f32 %v210_v63, %v209_v62 }
 0x169   :  { %v212_v1 = vmul.f32 %v211_v0, %v525_v18 }
 0x16b   :  { %v213_v2 = vsub.f32 %v202_v57, %v212_v1 }
 0x16d   :  { %v214_v3 = vmul.f32 %v213_v2, %v213_v2 }
 0x16f   :  { %v215_v5 = vsel %vm127_vm1, %v214_v3, 0.0 }
 0x170   :  { %v216_v6 = vrot.slane %v215_v5, 4 }
 0x172   :  { %v217_v8 = vadd.f32 %v216_v6, %v215_v5 }
 0x174   :  { %v218_v10 = vrot.slane %v217_v8, 2 }
 0x176   :  { %v219_v12 = vadd.f32 %v218_v10, %v217_v8 }
 0x178   :  { %v220_v14 = vrot.slane %v219_v12, 1 }
 0x17a   :  { %v221_v16 = vadd.f32 %v220_v14, %v219_v12 }
 0x17c   :  { %v222_v20 = vmul.f32 %v221_v16, %v525_v18  ;;  %v236_v18 = vld [vmem:[%s549_s4 + $0x1] sm:$0x1] }
 0x17e   :  { %v224_v21 = vadd.f32 1e-05, %v222_v20 }
 0x180   :  { %311 = vrsqrt.f32 %v224_v21  ;;  %vm231_vm7 = vweird.f32 %v224_v21 }
 0x186   :  { %v312_v22 = vpop.eup %311 }
 0x187   :  { %v226_v23 = vmul.f32 %v312_v22, %v224_v21  ;;  %vm232_vm6 = vweird.f32 %v312_v22 }
 0x188   :  { %vm233_vm8 = vmor %vm231_vm7, %vm232_vm6 }
 0x189   :  { %v227_v24 = vmul.f32 %v312_v22, %v226_v23 }
 0x18b   :  { %v228_v25 = vmul.f32 0.5, %v227_v24 }
 0x18d   :  { %v229_v26 = vsub.f32 1.5, %v228_v25 }
 0x18f   :  { %v230_v28 = vmul.f32 %v312_v22, %v229_v26 }
 0x191   :  { %v234_v29 = vsel %vm233_vm8, %v312_v22, %v230_v28 }
 0x192   :  { %v235_v30 = vmul.f32 %v234_v29, %v223_v27 }
 0x194   :  { %v237_v31 = vmul.f32 %v235_v30, %v212_v1  ;;  %v239_v32 = vperm.slane %v235_v30, 0 }
 0x196   :  { %v238_v33 = vsub.f32 %v236_v18, %v237_v31  ;;  %v240_v34 = vmul.f32 %v239_v32, %v202_v57 }
 0x198   :  { %v241_v35 = vperm.slane %v238_v33, 0 }
 0x19a   :  { %v242_v36 = vadd.f32 %v241_v35, %v240_v34 }
 0x19c   :  { %v243_v37 = vmax.f32 %v242_v36, 0.0 }
 0x19e   :  { %297 = vmatmul.msk.f32.vlgmr.msra.gmra.mxu2 %vm127_vm1, %v243_v37 }
 0x221   :  { %v272_v38 = vpop.f32.mrf.mxu2 }
 0x222   :  { %275 = vst [vmem:[#allocation11] sm:$0xff] %v272_v38 }
 0x223   :  { %286 = dma.vmem_to_hbm [thread:$0]  %s282_s24, 128, %s284_s27, [#allocation4]  }
 0x224   :  { %463 = dma.done.wait [#allocation4], 128  }
 0x225   :  { %464 = vsyncadd [#allocation4], 4294967168 }
 0x226   :  { %291 = vsyncpa [#allocation3], 1 }
 0x227   :  { %292 = vsyncpa [#allocation6], 1 }
 0x228   :  { %293 = vsyncpa [#allocation9], 1 }
 0x229   :  { %294 = vsyncpa [#allocation4], 1 }

</bundles_post_ra>
